<compile_context>
chip_gen: v7x
topology: tpu7x:2x2x1
jax: 0.10.0
libtpu: 0.0.40
codegen_flags: <defaults>
</compile_context>

<pallas_src>
import jax
import jax.numpy as jnp
from jax.experimental import pallas as pl
from jax.experimental.pallas import tpu as pltpu


def mlp_kernel(x_ref, w1_ref, b1_ref, w2_ref, b2_ref, o_ref):
    # fc1: (B, D_in) @ (D_in, H) -> f32 accumulate, bias + ReLU in f32 (VPU)
    h = jnp.dot(x_ref[...], w1_ref[...], preferred_element_type=jnp.float32)
    h = jnp.maximum(h + b1_ref[...], 0.0)
    # fc2: (B, H) @ (H, C) -> f32 accumulate, f32 bias.  Weights are
    # VMEM-resident, so keeping them f32 costs no HBM bandwidth.
    out = jnp.dot(h, w2_ref[...], preferred_element_type=jnp.float32)
    o_ref[...] = (out + b2_ref[...]).astype(o_ref.dtype)


def _cost_estimate(B, D_in, H, C):
    flops = 2 * B * (D_in * H + H * C)
    bytes_accessed = 4 * (B * (D_in + C) + D_in * H + H + H * C + C)
    return pl.CostEstimate(flops=flops, transcendentals=0,
                           bytes_accessed=bytes_accessed)


def _forward_whole(x, w1, b1, w2, b2):
    """Gridless path: one whole-array VMEM block (small problem, one call)."""
    B, D_in = x.shape
    H = w1.shape[1]
    C = w2.shape[1]
    vmem = pl.BlockSpec(memory_space=pltpu.MemorySpace.VMEM)
    return pl.pallas_call(
        mlp_kernel,
        out_shape=jax.ShapeDtypeStruct((B, C), jnp.float32),
        in_specs=[vmem, vmem, vmem, vmem, vmem],
        out_specs=vmem,
        cost_estimate=_cost_estimate(B, D_in, H, C),
    )(x, w1, b1, w2, b2)


def _forward_batch_tiled(x, w1, b1, w2, b2, block_b):
    """Batch-tiled path: stream x/out in block_b-row tiles, weights resident."""
    B, D_in = x.shape
    H = w1.shape[1]
    C = w2.shape[1]
    grid = (pl.cdiv(B, block_b),)
    return pl.pallas_call(
        mlp_kernel,
        out_shape=jax.ShapeDtypeStruct((B, C), jnp.float32),
        grid=grid,
        in_specs=[
            pl.BlockSpec((block_b, D_in), lambda i: (i, 0)),  # x: tiled on batch
            pl.BlockSpec((D_in, H), lambda i: (0, 0)),        # w1: resident
            pl.BlockSpec((1, H), lambda i: (0, 0)),           # b1: resident
            pl.BlockSpec((H, C), lambda i: (0, 0)),           # w2: resident
            pl.BlockSpec((1, C), lambda i: (0, 0)),           # b2: resident
        ],
        out_specs=pl.BlockSpec((block_b, C), lambda i: (i, 0)),
        compiler_params=pltpu.CompilerParams(
            # Independent batch tiles -> shard across v7x's 2 TensorCores.
            dimension_semantics=("parallel",)
        ),
        cost_estimate=_cost_estimate(B, D_in, H, C),
    )(x, w1, b1, w2, b2)


def _round_up(n, m):
    return ((n + m - 1) // m) * m


def simple_nn_forward(x, w1, b1, w2, b2, *, block_b=16384, gridless_max=4096):
    """Forward pass of SimpleNN (all-f32; the workload is HBM-bound so f32
    compute is free and keeps full accuracy).

    block_b:      batch rows per grid step on the tiled path.  16384 is safe
                  under every generation's default scoped-VMEM limit; raise to
                  32-64K on v6e/v7x (with vmem_limit_bytes) for a few extra %.
    gridless_max: batches at or below this use a single whole-array VMEM call.
    """
    x = x.astype(jnp.float32)
    w1 = w1.astype(jnp.float32)
    w2 = w2.astype(jnp.float32)
    b1 = jnp.reshape(b1, (1, -1)).astype(jnp.float32)
    b2 = jnp.reshape(b2, (1, -1)).astype(jnp.float32)

    B = x.shape[0]
    if B <= gridless_max:
        return _forward_whole(x, w1, b1, w2, b2)

    # Ensure >= 2 grid steps so the "parallel" batch axis actually shards
    # across both v7x TensorCores; keep the tile a multiple of 8 sublanes.
    tb = min(block_b, _round_up(-(-B // 2), 8))
    tb = max(8, tb)
    return _forward_batch_tiled(x, w1, b1, w2, b2, tb)


if __name__ == "__main__":
    # Shapes implied by SimpleNN(input_size, num_classes, hidden_size=16)
    batch, input_size, hidden_size, num_classes = 8, 32, 16, 4

    key = jax.random.PRNGKey(0)
    kx, kw1, kb1, kw2, kb2, kbig = jax.random.split(key, 6)

    x = jax.random.normal(kx, (batch, input_size), dtype=jnp.float32)

    # PyTorch Linear default init: U(-1/sqrt(fan_in), 1/sqrt(fan_in)),
    # weights stored as (in, out) = W.T so the kernel uses plain x @ w.
    lim1 = 1.0 / jnp.sqrt(input_size)
    lim2 = 1.0 / jnp.sqrt(hidden_size)
    w1 = jax.random.uniform(kw1, (input_size, hidden_size), jnp.float32, -lim1, lim1)
    b1 = jax.random.uniform(kb1, (1, hidden_size), jnp.float32, -lim1, lim1)
    w2 = jax.random.uniform(kw2, (hidden_size, num_classes), jnp.float32, -lim2, lim2)
    b2 = jax.random.uniform(kb2, (1, num_classes), jnp.float32, -lim2, lim2)

    def ref_fn(xx):
        return jnp.maximum(xx @ w1 + b1, 0.0) @ w2 + b2

    # --- small batch: gridless whole-array VMEM path -------------------------
    out = simple_nn_forward(x, w1, b1, w2, b2)
    jax.block_until_ready(out)
    assert out.shape == (batch, num_classes)
    assert jnp.allclose(out, ref_fn(x), atol=1e-5, rtol=1e-5)

    # --- tiled path exercised at small scale: force routing with small caps --
    # (B=1024 > gridless_max=256 -> tiled; block_b=512 -> grid of 2 steps,
    #  same code path as the production >=16K-row tiles.)
    big_b = 1024
    x_big = jax.random.normal(kbig, (big_b, input_size), dtype=jnp.float32)
    out_big = simple_nn_forward(x_big, w1, b1, w2, b2,
                                block_b=512, gridless_max=256)
    jax.block_until_ready(out_big)
    assert out_big.shape == (big_b, num_classes)
    assert jnp.allclose(out_big, ref_fn(x_big), atol=1e-5, rtol=1e-5)

    print("KERNEL_OK")
</pallas_src>

<mosaic_0001>
module attributes {stable_mosaic.version = 11 : i64} {
  func.func @mlp_kernel(%arg0: memref<8x32xf32, #tpu.memory_space<vmem>>, %arg1: memref<32x16xf32, #tpu.memory_space<vmem>>, %arg2: memref<1x16xf32, #tpu.memory_space<vmem>>, %arg3: memref<16x4xf32, #tpu.memory_space<vmem>>, %arg4: memref<1x4xf32, #tpu.memory_space<vmem>>, %arg5: memref<8x4xf32, #tpu.memory_space<vmem>>) attributes {dimension_semantics = [], scalar_prefetch = 0 : i64, scratch_operands = 0 : i64, tpu.core_type = #tpu.core_type<tc>} {
    %c0 = arith.constant 0 : index
    %c0_0 = arith.constant 0 : index
    %0 = vector.load %arg0[%c0, %c0_0] : memref<8x32xf32, #tpu.memory_space<vmem>>, vector<8x32xf32>
    %c0_1 = arith.constant 0 : index
    %c0_2 = arith.constant 0 : index
    %1 = vector.load %arg1[%c0_1, %c0_2] : memref<32x16xf32, #tpu.memory_space<vmem>>, vector<32x16xf32>
    %cst = arith.constant dense<0.000000e+00> : vector<8x16xf32>
    %2 = tpu.matmul %0, %1, %cst {dimension_numbers = #tpu.dot_dimension_numbers<[1], [0], [0], [1], [0, 0, 1, 1], [], []>} : vector<8x32xf32>, vector<32x16xf32>, vector<8x16xf32> -> vector<8x16xf32>
    %c0_3 = arith.constant 0 : index
    %c0_4 = arith.constant 0 : index
    %3 = vector.load %arg2[%c0_3, %c0_4] : memref<1x16xf32, #tpu.memory_space<vmem>>, vector<1x16xf32>
    %4 = vector.broadcast %3 : vector<1x16xf32> to vector<8x16xf32>
    %5 = arith.addf %2, %4 : vector<8x16xf32>
    %cst_5 = arith.constant 0.000000e+00 : f32
    %6 = vector.broadcast %cst_5 : f32 to vector<8x16xf32>
    %7 = arith.maximumf %5, %6 : vector<8x16xf32>
    %c0_6 = arith.constant 0 : index
    %c0_7 = arith.constant 0 : index
    %8 = vector.load %arg3[%c0_6, %c0_7] : memref<16x4xf32, #tpu.memory_space<vmem>>, vector<16x4xf32>
    %cst_8 = arith.constant dense<0.000000e+00> : vector<8x4xf32>
    %9 = tpu.matmul %7, %8, %cst_8 {dimension_numbers = #tpu.dot_dimension_numbers<[1], [0], [0], [1], [0, 0, 1, 1], [], []>} : vector<8x16xf32>, vector<16x4xf32>, vector<8x4xf32> -> vector<8x4xf32>
    %c0_9 = arith.constant 0 : index
    %c0_10 = arith.constant 0 : index
    %10 = vector.load %arg4[%c0_9, %c0_10] : memref<1x4xf32, #tpu.memory_space<vmem>>, vector<1x4xf32>
    %11 = vector.broadcast %10 : vector<1x4xf32> to vector<8x4xf32>
    %12 = arith.addf %9, %11 : vector<8x4xf32>
    %c0_11 = arith.constant 0 : index
    %c0_12 = arith.constant 0 : index
    %13 = vector.load %arg5[%c0_11, %c0_12] : memref<8x4xf32, #tpu.memory_space<vmem>>, vector<8x4xf32>
    tpu.vector_store %arg5[%c0_11, %c0_12], %12 {strides = array<i32>} : memref<8x4xf32, #tpu.memory_space<vmem>>, vector<8x4xf32>,
    return
  }
}

</mosaic_0001>

<bundles_post_ra>
// kernel: tpu_custom_call.1
= control target key start
LH: loop header
LB: loop body
LE: loop exit
PB: predicated region body
PF: predicated region fallthrough
CT: control target
= control target key end

     0   :  { %v238_v0 = vmov 0.0|0.0   ;;  %vm239_vm0 = vmmov 0   ;;  %v240_v4 = vmov 0.0   ;;  %vm32_vm1 = vcmask 261120   ;;  %s301_s1 = inlined_call_operand.vmem [shape: f32[32,16], index: 1, kind: input, shape index: {}]   ;;  %s302_s0 = inlined_call_operand.vmem [shape: f32[8,32], index: 0, kind: input, shape index: {}]   ;;  %s303_s3 = inlined_call_operand.vmem [shape: f32[16,4], index: 3, kind: input, shape index: {}]   ;;  %s304_s2 = inlined_call_operand.vmem [shape: f32[1,16], index: 2, kind: input, shape index: {}]   ;;  %s305_s4 = inlined_call_operand.vmem [shape: f32[1,4], index: 4, kind: input, shape index: {}]   ;;  %s306_s5 = inlined_call_operand.vmem [shape: f32[8,4], index: 5, kind: output, shape index: {}]  }
   0x1   :  { %226 = vmatprep.subr.bf16.mxu0 %v238_v0  ;;  %v21_v1 = vld [vmem:[%s301_s1] sm:$0xff]  ;;  %v22_v2 = vld [vmem:[%s301_s1 + $0x8] sm:$0xff]  ;;  %v23_v3 = vld [vmem:[%s301_s1 + $0x10] sm:$0xff]  ;;  %216 = vmatprep.mubr.msk.f32.mxu0 %vm239_vm0, %v240_v4  ;;  %vm116_vm2 = vcmask 130048   ;;  %vm190_vm3 = vcmask 31744  }
   0x2   :  { %v227_v5 = vpack.c.bf16 %v22_v2, %v21_v1  ;;  %v24_v6 = vld [vmem:[%s301_s1 + $0x18] sm:$0xff]  ;;  %232 = vmatprep.subr.bf16.mxu1 %v238_v0  ;;  %223 = vmatprep.mubr.msk.f32.mxu1 %vm239_vm0, %v240_v4  ;;  %v20_v8 = vld [vmem:[%s302_s0] sm:$0xff]  ;;  %v108_v10 = vld [vmem:[%s303_s3 + $0x8] sm:$0xff] }
   0x3   :  { %v230_v7 = vpack.c.bf16 %v24_v6, %v23_v3  ;;  %v107_v9 = vld [vmem:[%s303_s3] sm:$0xff] }
   0x4   :  { %228 = vmatpush3.bf16.msra.mxu0 %v227_v5  ;;  %v233_v11 = vpack.c.bf16 %v108_v10, %v107_v9  ;;  %v196_v12 = vld [vmem:[%s304_s2] ss:$0 sm:$0xff] }
   0x5   :  { %229 = vmatprep.subr.bf16.mxu0 %v238_v0  ;;  %v198_v17 = vld [vmem:[%s305_s4] ss:$0 sm:$0xff] }
   0x6   :  { %234 = vmatpush3.bf16.msra.mxu1 %v233_v11 }
   0x8   :  { %231 = vmatpush3.bf16.msra.mxu0 %v230_v7 }
   0xb   :  { %217 = vmatmul.mubr.msk.f32.vlgmr.msra.gmra.mrb[0].mxu0 %vm32_vm1, %v20_v8 }
  0xde   :  { %v102_v13 = vpop.f32.mrb[0].mxu0 }
  0xdf   :  { %v103_v14 = vadd.f32 %v196_v12, %v102_v13  ;;  %v218_v15 = vpop.f32.mrb[1].mxu0 }
  0xe1   :  { %v106_v16 = vmax.f32 %v103_v14, 0.0 }
  0xe3   :  { %224 = vmatmul.mubr.msk.f32.vlgmr.msra.gmra.mrb[0].mxu1 %vm116_vm2, %v106_v16 }
 0x1b6   :  { %v186_v18 = vpop.f32.mrb[0].mxu1 }
 0x1b7   :  { %v187_v19 = vadd.f32 %v198_v17, %v186_v18  ;;  %v225_v20 = vpop.f32.mrb[1].mxu1 }
 0x1b9   :  { %191 = vst.msk [vmem:[%s306_s5] sm:$0xff] %vm190_vm3, %v187_v19 }

</bundles_post_ra>
